<compile_context>
chip_gen: v5e
topology: v5e:2x2
jax: 0.10.0
libtpu: 0.0.40
codegen_flags: <defaults>
</compile_context>

<pallas_src>
import functools
import math

import jax
import jax.numpy as jnp
from jax import lax
from jax.experimental import pallas as pl
from jax.experimental.pallas import tpu as pltpu


def _dqn_kernel(x_ref, *refs, num_layers, sub_b, num_sub, compute_dtype):
    """Fused MLP on a (tile_b, S) batch-major slab, processed in sub_b-row sub-slabs."""
    out_ref = refs[-1]
    param_refs = refs[:-1]

    # Weights/biases are tiny, replicated across grid steps (constant index_map):
    # load once per grid step, hoisted out of the sub-slab loop.
    ws = [param_refs[2 * i][...] for i in range(num_layers)]                    # (out, in)
    bs = [param_refs[2 * i + 1][...].astype(jnp.float32) for i in range(num_layers)]  # (1, out)

    def body(s, carry):
        r0 = pl.multiple_of(s * sub_b, sub_b)
        h = x_ref[pl.ds(r0, sub_b), :].astype(compute_dtype)                    # (sub_b, S)
        acc = None
        for i in range(num_layers):
            # (sub_b, in) x (out, in) contracted on the `in` axis -> (sub_b, out).
            acc = lax.dot_general(
                h, ws[i],
                dimension_numbers=(((1,), (1,)), ((), ())),
                preferred_element_type=jnp.float32) + bs[i]                     # f32 math
            if i != num_layers - 1:
                h = jnp.maximum(acc, 0.0).astype(compute_dtype)                 # ReLU (f32) -> MXU dtype
        out_ref[pl.ds(r0, sub_b), :] = acc.astype(out_ref.dtype)
        return carry

    lax.fori_loop(0, num_sub, body, 0, unroll=(num_sub <= 4))


def init_dqn_params(key, state_dim, action_dim, num_layers=3, hidden_dim=32):
    """Deterministic init mimicking nn.Linear defaults (uniform +/- 1/sqrt(fan_in)).

    Weights are (out_dim, in_dim) -- PyTorch nn.Linear layout.  Biases are (1, out_dim)
    so they broadcast over the batch (sublane) axis inside the kernel.
    """
    params = []
    in_dim = state_dim
    for idx in range(num_layers):
        out_dim = action_dim if idx == num_layers - 1 else hidden_dim
        key, kw, kb = jax.random.split(key, 3)
        bound = 1.0 / math.sqrt(in_dim)
        w = jax.random.uniform(kw, (out_dim, in_dim), jnp.float32, -bound, bound)
        b = jax.random.uniform(kb, (1, out_dim), jnp.float32, -bound, bound)
        params.append((w, b))
        in_dim = out_dim
    return params


def dqn_forward(states, params, *, tile_b=2048, sub_b=256, compute_dtype=jnp.bfloat16):
    """Q(s, .) for states of shape (*, S) -> (*, A)."""
    state_dim = params[0][0].shape[1]
    action_dim = params[-1][0].shape[0]
    num_layers = len(params)

    lead_shape = states.shape[:-1]
    x = states.reshape(-1, state_dim)
    n = x.shape[0]

    # --- tile sizing -----------------------------------------------------------------
    # sub_b : inner sub-slab (rows computed at once) -> caps live f32 vregs.
    # tile_b: DMA-amortization unit, a multiple of sub_b, capped so that large problems
    #         keep >= 4 grid steps (2 TensorCores on v7x each get >= 2 steps).
    sub_b = max(128, (sub_b // 128) * 128)
    n_sub_total = pl.cdiv(n, sub_b)
    tile_b = max(sub_b, (tile_b // sub_b) * sub_b)
    tile_b = min(tile_b, n_sub_total * sub_b)
    if n_sub_total >= 4:
        tile_b = min(tile_b, pl.cdiv(n_sub_total, 4) * sub_b)
    num_sub = tile_b // sub_b
    n_pad = pl.cdiv(n, tile_b) * tile_b

    # Only the ragged tail needs padding; no transpose of the dominant tensor anywhere.
    if n_pad != n:
        x = jnp.pad(x, ((0, n_pad - n), (0, 0)))

    flat_params = []
    in_specs = [pl.BlockSpec((tile_b, state_dim), lambda i: (i, 0))]
    flops = 0
    bytes_accessed = n * state_dim * x.dtype.itemsize + n * action_dim * states.dtype.itemsize
    for (w, b) in params:
        flat_params.append(w.astype(compute_dtype))          # tiny, resident, bf16 MXU path
        flat_params.append(b.astype(jnp.float32))             # bias/ReLU math stays f32
        in_specs.append(pl.BlockSpec(w.shape, lambda i: (0, 0)))   # replicated weight
        in_specs.append(pl.BlockSpec(b.shape, lambda i: (0, 0)))   # replicated bias
        flops += 2 * n * w.shape[0] * w.shape[1]
        bytes_accessed += w.size * jnp.dtype(compute_dtype).itemsize + b.size * 4

    q_flat = pl.pallas_call(
        functools.partial(_dqn_kernel, num_layers=num_layers, sub_b=sub_b,
                          num_sub=num_sub, compute_dtype=compute_dtype),
        out_shape=jax.ShapeDtypeStruct((n_pad, action_dim), states.dtype),
        grid_spec=pltpu.PrefetchScalarGridSpec(
            num_scalar_prefetch=0,
            grid=(n_pad // tile_b,),
            in_specs=in_specs,
            out_specs=pl.BlockSpec((tile_b, action_dim), lambda i: (i, 0)),
        ),
        compiler_params=pltpu.CompilerParams(
            dimension_semantics=("parallel",)),   # batch tiles shard across TCs on v7x
        cost_estimate=pl.CostEstimate(
            flops=flops, transcendentals=0, bytes_accessed=bytes_accessed),
    )(x, *flat_params)

    if n_pad != n:
        q_flat = q_flat[:n]
    return q_flat.reshape(*lead_shape, action_dim)


def dqn_reference(states, params):
    """Plain-JAX f32 reference (PyTorch semantics: x @ W.T + b)."""
    h = states.astype(jnp.float32)
    for i, (w, b) in enumerate(params):
        h = jnp.dot(h, w.T, precision=lax.Precision.HIGHEST) + b[0]
        if i != len(params) - 1:
            h = jnp.maximum(h, 0.0)
    return h.astype(states.dtype)


if __name__ == "__main__":
    key = jax.random.PRNGKey(0)

    state_dim, action_dim = 8, 4
    num_layers, hidden_dim = 3, 32

    kp, kx, kx2, kx3 = jax.random.split(key, 4)
    params = init_dqn_params(kp, state_dim, action_dim,
                             num_layers=num_layers, hidden_dim=hidden_dim)

    # 1) Small batch, default bf16 MXU path (single tile, padded rows sliced off).
    states = jax.random.normal(kx, (2, state_dim), jnp.float32)
    q_ref = dqn_reference(states, params)
    q_bf16 = jax.block_until_ready(dqn_forward(states, params))
    assert q_bf16.shape == (2, action_dim), q_bf16.shape
    assert jnp.allclose(q_bf16, q_ref, atol=1e-1, rtol=1e-1), "mismatch (bf16 path)"

    # 2) Same batch, f32 compute path -> tight tolerance.
    q_f32 = jax.block_until_ready(dqn_forward(states, params, compute_dtype=jnp.float32))
    assert jnp.allclose(q_f32, q_ref, atol=1e-4, rtol=1e-4), "mismatch (f32 path)"

    # 3) Multi-tile grid (grid=2) with a partial (padded) last tile, leading dims.
    states2 = jax.random.normal(kx2, (3, 101, state_dim), jnp.float32)
    q2 = jax.block_until_ready(
        dqn_forward(states2, params, tile_b=256, compute_dtype=jnp.float32))
    q2_ref = dqn_reference(states2, params)
    assert q2.shape == (3, 101, action_dim), q2.shape
    assert jnp.allclose(q2, q2_ref, atol=1e-4, rtol=1e-4), "mismatch (multi-tile)"

    # 4) Large batch: 4 parallel grid steps x 8 inner sub-slabs (non-unrolled fori_loop).
    states3 = jax.random.normal(kx3, (8192, state_dim), jnp.float32)
    q3 = jax.block_until_ready(
        dqn_forward(states3, params, tile_b=2048, compute_dtype=jnp.float32))
    q3_ref = dqn_reference(states3, params)
    assert q3.shape == (8192, action_dim), q3.shape
    assert jnp.allclose(q3, q3_ref, atol=1e-4, rtol=1e-4), "mismatch (large batch)"

    print("KERNEL_OK")
</pallas_src>

<mosaic_0001>
module attributes {stable_mosaic.version = 11 : i64} {
  func.func @_dqn_kernel(%arg0: i32, %arg1: memref<256x8xf32, #tpu.memory_space<vmem>>, %arg2: memref<32x8xbf16, #tpu.memory_space<vmem>>, %arg3: memref<1x32xf32, #tpu.memory_space<vmem>>, %arg4: memref<32x32xbf16, #tpu.memory_space<vmem>>, %arg5: memref<1x32xf32, #tpu.memory_space<vmem>>, %arg6: memref<4x32xbf16, #tpu.memory_space<vmem>>, %arg7: memref<1x4xf32, #tpu.memory_space<vmem>>, %arg8: memref<256x4xf32, #tpu.memory_space<vmem>>) attributes {dimension_semantics = [#tpu.dimension_semantics<parallel>], iteration_bounds = array<i64: 1>, scalar_prefetch = 0 : i64, scratch_operands = 0 : i64, tpu.core_type = #tpu.core_type<tc>, window_params = [{transform_indices = @transform_0, window_bounds = array<i64: 256, 8>}, {pipeline_mode = #tpu.pipeline_mode<synchronous>, transform_indices = @transform_1, window_bounds = array<i64: 32, 8>}, {pipeline_mode = #tpu.pipeline_mode<synchronous>, transform_indices = @transform_2, window_bounds = array<i64: 1, 32>}, {pipeline_mode = #tpu.pipeline_mode<synchronous>, transform_indices = @transform_3, window_bounds = array<i64: 32, 32>}, {pipeline_mode = #tpu.pipeline_mode<synchronous>, transform_indices = @transform_4, window_bounds = array<i64: 1, 32>}, {pipeline_mode = #tpu.pipeline_mode<synchronous>, transform_indices = @transform_5, window_bounds = array<i64: 4, 32>}, {pipeline_mode = #tpu.pipeline_mode<synchronous>, transform_indices = @transform_6, window_bounds = array<i64: 1, 4>}, {transform_indices = @transform_7, window_bounds = array<i64: 256, 4>}]} {
    %c0 = arith.constant 0 : index
    %c0_0 = arith.constant 0 : index
    %0 = vector.load %arg2[%c0, %c0_0] : memref<32x8xbf16, #tpu.memory_space<vmem>>, vector<32x8xbf16>
    %c0_1 = arith.constant 0 : index
    %c0_2 = arith.constant 0 : index
    %1 = vector.load %arg4[%c0_1, %c0_2] : memref<32x32xbf16, #tpu.memory_space<vmem>>, vector<32x32xbf16>
    %c0_3 = arith.constant 0 : index
    %c0_4 = arith.constant 0 : index
    %2 = vector.load %arg6[%c0_3, %c0_4] : memref<4x32xbf16, #tpu.memory_space<vmem>>, vector<4x32xbf16>
    %c0_5 = arith.constant 0 : index
    %c0_6 = arith.constant 0 : index
    %3 = vector.load %arg3[%c0_5, %c0_6] : memref<1x32xf32, #tpu.memory_space<vmem>>, vector<1x32xf32>
    %c0_7 = arith.constant 0 : index
    %c0_8 = arith.constant 0 : index
    %4 = vector.load %arg5[%c0_7, %c0_8] : memref<1x32xf32, #tpu.memory_space<vmem>>, vector<1x32xf32>
    %c0_9 = arith.constant 0 : index
    %c0_10 = arith.constant 0 : index
    %5 = vector.load %arg7[%c0_9, %c0_10] : memref<1x4xf32, #tpu.memory_space<vmem>>, vector<1x4xf32>
    %c0_i32 = arith.constant 0 : i32
    %c256_i32 = arith.constant 256 : i32
    %6 = arith.muli %c0_i32, %c256_i32 : i32
    %7 = tpu.assume_multiple %6, 256 : i32
    %8 = arith.index_cast %7 : i32 to index
    %c0_11 = arith.constant 0 : index
    %9 = vector.load %arg1[%8, %c0_11] : memref<256x8xf32, #tpu.memory_space<vmem>>, vector<256x8xf32>
    %10 = arith.truncf %9 : vector<256x8xf32> to vector<256x8xbf16>
    %cst = arith.constant dense<0.000000e+00> : vector<256x32xf32>
    %11 = tpu.matmul %10, %0, %cst {dimension_numbers = #tpu.dot_dimension_numbers<[1], [1], [0], [0], [0, 0, 1, 0], [], []>} : vector<256x8xbf16>, vector<32x8xbf16>, vector<256x32xf32> -> vector<256x32xf32>
    %12 = vector.broadcast %3 : vector<1x32xf32> to vector<256x32xf32>
    %13 = arith.addf %11, %12 : vector<256x32xf32>
    %cst_12 = arith.constant 0.000000e+00 : f32
    %14 = vector.broadcast %cst_12 : f32 to vector<256x32xf32>
    %15 = arith.maximumf %13, %14 : vector<256x32xf32>
    %16 = arith.truncf %15 : vector<256x32xf32> to vector<256x32xbf16>
    %cst_13 = arith.constant dense<0.000000e+00> : vector<256x32xf32>
    %17 = tpu.matmul %16, %1, %cst_13 {dimension_numbers = #tpu.dot_dimension_numbers<[1], [1], [0], [0], [0, 0, 1, 0], [], []>} : vector<256x32xbf16>, vector<32x32xbf16>, vector<256x32xf32> -> vector<256x32xf32>
    %18 = vector.broadcast %4 : vector<1x32xf32> to vector<256x32xf32>
    %19 = arith.addf %17, %18 : vector<256x32xf32>
    %cst_14 = arith.constant 0.000000e+00 : f32
    %20 = vector.broadcast %cst_14 : f32 to vector<256x32xf32>
    %21 = arith.maximumf %19, %20 : vector<256x32xf32>
    %22 = arith.truncf %21 : vector<256x32xf32> to vector<256x32xbf16>
    %cst_15 = arith.constant dense<0.000000e+00> : vector<256x4xf32>
    %23 = tpu.matmul %22, %2, %cst_15 {dimension_numbers = #tpu.dot_dimension_numbers<[1], [1], [0], [0], [0, 0, 1, 0], [], []>} : vector<256x32xbf16>, vector<4x32xbf16>, vector<256x4xf32> -> vector<256x4xf32>
    %24 = vector.broadcast %5 : vector<1x4xf32> to vector<256x4xf32>
    %25 = arith.addf %23, %24 : vector<256x4xf32>
    %26 = arith.index_cast %7 : i32 to index
    %c0_16 = arith.constant 0 : index
    %27 = vector.load %arg8[%26, %c0_16] : memref<256x4xf32, #tpu.memory_space<vmem>>, vector<256x4xf32>
    tpu.vector_store %arg8[%26, %c0_16], %25 {strides = array<i32>} : memref<256x4xf32, #tpu.memory_space<vmem>>, vector<256x4xf32>,
    %c1_i32 = arith.constant 1 : i32
    return
  }
  func.func @transform_0(%arg0: i32) -> (i32, i32) {
    %c0_i32 = arith.constant 0 : i32
    %c0_i32_0 = arith.constant 0 : i32
    return %arg0, %c0_i32 : i32, i32
  }
  func.func @transform_1(%arg0: i32) -> (i32, i32) {
    %c0_i32 = arith.constant 0 : i32
    %c0_i32_0 = arith.constant 0 : i32
    %c0_i32_1 = arith.constant 0 : i32
    return %c0_i32, %c0_i32_0 : i32, i32
  }
  func.func @transform_2(%arg0: i32) -> (i32, i32) {
    %c0_i32 = arith.constant 0 : i32
    %c0_i32_0 = arith.constant 0 : i32
    %c0_i32_1 = arith.constant 0 : i32
    return %c0_i32, %c0_i32_0 : i32, i32
  }
  func.func @transform_3(%arg0: i32) -> (i32, i32) {
    %c0_i32 = arith.constant 0 : i32
    %c0_i32_0 = arith.constant 0 : i32
    %c0_i32_1 = arith.constant 0 : i32
    return %c0_i32, %c0_i32_0 : i32, i32
  }
  func.func @transform_4(%arg0: i32) -> (i32, i32) {
    %c0_i32 = arith.constant 0 : i32
    %c0_i32_0 = arith.constant 0 : i32
    %c0_i32_1 = arith.constant 0 : i32
    return %c0_i32, %c0_i32_0 : i32, i32
  }
  func.func @transform_5(%arg0: i32) -> (i32, i32) {
    %c0_i32 = arith.constant 0 : i32
    %c0_i32_0 = arith.constant 0 : i32
    %c0_i32_1 = arith.constant 0 : i32
    return %c0_i32, %c0_i32_0 : i32, i32
  }
  func.func @transform_6(%arg0: i32) -> (i32, i32) {
    %c0_i32 = arith.constant 0 : i32
    %c0_i32_0 = arith.constant 0 : i32
    %c0_i32_1 = arith.constant 0 : i32
    return %c0_i32, %c0_i32_0 : i32, i32
  }
  func.func @transform_7(%arg0: i32) -> (i32, i32) {
    %c0_i32 = arith.constant 0 : i32
    %c0_i32_0 = arith.constant 0 : i32
    return %arg0, %c0_i32 : i32, i32
  }
}

</mosaic_0001>

<bundles_post_ra>
// kernel: tpu_custom_call.1
= control target key start
LH: loop header
LB: loop body
LE: loop exit
PB: predicated region body
PF: predicated region fallthrough
CT: control target
= control target key end

     0   :  { %vm100_vm0 = vcmask 64512   ;;  %vm305_vm1 = vcmask 261120   ;;  %vm640_vm2 = vcmask 31744   ;;  %s1199_s1 = inlined_call_operand.vmem [shape: bf16[32,8], index: 1, kind: input, shape index: {}]   ;;  %s1200_s2 = inlined_call_operand.vmem [shape: f32[1,32], index: 2, kind: input, shape index: {}]   ;;  %s1201_s0 = inlined_call_operand.vmem [shape: f32[256,8], index: 0, kind: input, shape index: {}]   ;;  %s1202_s3 = inlined_call_operand.vmem [shape: bf16[32,32], index: 3, kind: input, shape index: {}]   ;;  %s1203_s4 = inlined_call_operand.vmem [shape: f32[1,32], index: 4, kind: input, shape index: {}]   ;;  %s1204_s5 = inlined_call_operand.vmem [shape: bf16[4,32], index: 5, kind: input, shape index: {}]   ;;  %s1205_s6 = inlined_call_operand.vmem [shape: f32[1,4], index: 6, kind: input, shape index: {}]   ;;  %s1206_s7 = inlined_call_operand.vmem [shape: f32[256,4], index: 7, kind: output, shape index: {}]  }
   0x1   :  { %v742_v0 = vld [vmem:[%s1199_s1 + $0x8] sm:$0xff]  ;;  %v741_v2 = vld [vmem:[%s1199_s1] sm:$0xff]  ;;  %v41_v7 = vld [vmem:[%s1201_s0 + $0x10] sm:$0xff] }
   0x2   :  { %v153_v1 = vsel %vm100_vm0, %v742_v0, 0  ;;  %v150_v3 = vsel %vm100_vm0, %v741_v2, 0  ;;  %v39_v4 = vld [vmem:[%s1201_s0] sm:$0xff]  ;;  %v40_v5 = vld [vmem:[%s1201_s0 + $0x8] sm:$0xff]  ;;  %v42_v8 = vld [vmem:[%s1201_s0 + $0x18] sm:$0xff] }
   0x3   :  { %161 = vmatpush.bf16.xpose.msra.mxu0 %v153_v1  ;;  %745 = vmatpush.bf16.xpose.msra.mxu3 %v153_v1  ;;  %v71_v6 = vpack.c.bf16 %v40_v5, %v39_v4  ;;  %v72_v9 = vpack.c.bf16 %v42_v8, %v41_v7  ;;  %v43_v10 = vld [vmem:[%s1201_s0 + $0x20] sm:$0xff]  ;;  %v44_v11 = vld [vmem:[%s1201_s0 + $0x28] sm:$0xff]  ;;  %v45_v13 = vld [vmem:[%s1201_s0 + $0x30] sm:$0xff] }
   0x4   :  { %v73_v12 = vpack.c.bf16 %v44_v11, %v43_v10  ;;  %v46_v14 = vld [vmem:[%s1201_s0 + $0x38] sm:$0xff]  ;;  %v47_v16 = vld [vmem:[%s1201_s0 + $0x40] sm:$0xff]  ;;  %v48_v17 = vld [vmem:[%s1201_s0 + $0x48] sm:$0xff] }
   0x5   :  { %v74_v15 = vpack.c.bf16 %v46_v14, %v45_v13  ;;  %v75_v18 = vpack.c.bf16 %v48_v17, %v47_v16  ;;  %v63_v19 = vld [vmem:[%s1201_s0 + $0xc0] sm:$0xff]  ;;  %v64_v20 = vld [vmem:[%s1201_s0 + $0xc8] sm:$0xff]  ;;  %v49_v22 = vld [vmem:[%s1201_s0 + $0x50] sm:$0xff] }
   0x6   :  { %v83_v21 = vpack.c.bf16 %v64_v20, %v63_v19  ;;  %v50_v23 = vld [vmem:[%s1201_s0 + $0x58] sm:$0xff]  ;;  %v65_v25 = vld [vmem:[%s1201_s0 + $0xd0] sm:$0xff]  ;;  %v51_v28 = vld [vmem:[%s1201_s0 + $0x60] sm:$0xff] }
   0x7   :  { %v76_v24 = vpack.c.bf16 %v50_v23, %v49_v22  ;;  %v66_v26 = vld [vmem:[%s1201_s0 + $0xd8] sm:$0xff]  ;;  %v52_v29 = vld [vmem:[%s1201_s0 + $0x68] sm:$0xff]  ;;  %v743_v33 = vld [vmem:[%s1202_s3] sm:$0xff] }
   0x8   :  { %v84_v27 = vpack.c.bf16 %v66_v26, %v65_v25  ;;  %v744_v30 = vld [vmem:[%s1202_s3 + $0x8] sm:$0xff]  ;;  %v77_v31 = vpack.c.bf16 %v52_v29, %v51_v28  ;;  %v355_v34 = vsel %vm305_vm1, %v743_v33, 0  ;;  %v53_v35 = vld [vmem:[%s1201_s0 + $0x70] sm:$0xff]  ;;  %v54_v36 = vld [vmem:[%s1201_s0 + $0x78] sm:$0xff] }
   0x9   :  { %v358_v32 = vsel %vm305_vm1, %v744_v30, 0  ;;  %v67_v37 = vld [vmem:[%s1201_s0 + $0xe0] sm:$0xff]  ;;  %v68_v38 = vld [vmem:[%s1201_s0 + $0xe8] sm:$0xff]  ;;  %v78_v40 = vpack.c.bf16 %v54_v36, %v53_v35  ;;  %v69_v43 = vld [vmem:[%s1201_s0 + $0xf0] sm:$0xff] }
   0xa   :  { %366 = vmatpush.bf16.xpose.msra.mxu1 %v358_v32  ;;  %v85_v39 = vpack.c.bf16 %v68_v38, %v67_v37  ;;  %v55_v41 = vld [vmem:[%s1201_s0 + $0x80] sm:$0xff]  ;;  %v56_v42 = vld [vmem:[%s1201_s0 + $0x88] sm:$0xff]  ;;  %v70_v44 = vld [vmem:[%s1201_s0 + $0xf8] sm:$0xff] }
   0xb   :  { %162 = vmatpush.bf16.xpose.msra.mxu0 %v150_v3  ;;  %746 = vmatpush.bf16.xpose.msra.mxu3 %v150_v3  ;;  %v86_v45 = vpack.c.bf16 %v70_v44, %v69_v43  ;;  %v79_v46 = vpack.c.bf16 %v56_v42, %v55_v41  ;;  %v902_v48 = vld [vmem:[%s1200_s2] ss:$0 sm:$0xff]  ;;  %v57_v54 = vld [vmem:[%s1201_s0 + $0x90] sm:$0xff]  ;;  %v58_v55 = vld [vmem:[%s1201_s0 + $0x98] sm:$0xff] }
   0xc   :  { %v80_v57 = vpack.c.bf16 %v58_v55, %v57_v54  ;;  %v59_v0 = vld [vmem:[%s1201_s0 + $0xa0] sm:$0xff]  ;;  %v60_v1 = vld [vmem:[%s1201_s0 + $0xa8] sm:$0xff]  ;;  %v61_v10 = vld [vmem:[%s1201_s0 + $0xb0] sm:$0xff] }
   0xd   :  { %v81_v3 = vpack.c.bf16 %v60_v1, %v59_v0  ;;  %v62_v11 = vld [vmem:[%s1201_s0 + $0xb8] sm:$0xff] }
   0xe   :  { %v82_v13 = vpack.c.bf16 %v62_v11, %v61_v10 }
  0x12   :  { %685 = vmatmul.msk.bf16.vlgmr.msra.gmra.mxu0 %vm100_vm0, %v71_v6  ;;  %697 = vmatmul.msk.bf16.vlgmr.msra.gmra.mxu3 %vm100_vm0, %v83_v21 }
  0x13   :  { %747 = vmatpush.bf16.xpose.msrb.mxu3 %v358_v32  ;;  %367 = vmatpush.bf16.xpose.msra.mxu1 %v355_v34 }
  0x1b   :  { %748 = vmatpush.bf16.xpose.msrb.mxu3 %v355_v34 }
  0x22   :  { %686 = vmatmul.msk.bf16.gmra.mxu0 %vm100_vm0, %v72_v9  ;;  %698 = vmatmul.msk.bf16.gmra.mxu3 %vm100_vm0, %v84_v27 }
  0x32   :  { %687 = vmatmul.msk.bf16.gmra.mxu0 %vm100_vm0, %v73_v12  ;;  %699 = vmatmul.msk.bf16.gmra.mxu3 %vm100_vm0, %v85_v39 }
  0x42   :  { %688 = vmatmul.msk.bf16.gmra.mxu0 %vm100_vm0, %v74_v15  ;;  %700 = vmatmul.msk.bf16.gmra.mxu3 %vm100_vm0, %v86_v45 }
  0x52   :  { %689 = vmatmul.msk.bf16.gmra.mxu0 %vm100_vm0, %v75_v18 }
  0x62   :  { %690 = vmatmul.msk.bf16.gmra.mxu0 %vm100_vm0, %v76_v24 }
  0x72   :  { %691 = vmatmul.msk.bf16.gmra.mxu0 %vm100_vm0, %v77_v31 }
  0x82   :  { %692 = vmatmul.msk.bf16.gmra.mxu0 %vm100_vm0, %v78_v40 }
  0x8f   :  { %v164_v47 = vpop.f32.mrf.mxu0 }
  0x90   :  { %v165_v49 = vadd.f32 %v902_v48, %v164_v47 }
  0x92   :  { %693 = vmatmul.msk.bf16.gmra.mxu0 %vm100_vm0, %v79_v46  ;;  %v244_v52 = vmax.f32 %v165_v49, 0.0 }
  0x95   :  { %v224_v29 = vpop.f32.mrf.mxu3 }
  0x96   :  { %v225_v31 = vadd.f32 %v902_v48, %v224_v29 }
  0x97   :  { %v166_v50 = vpop.f32.mrf.mxu0 }
  0x98   :  { %v167_v51 = vadd.f32 %v902_v48, %v166_v50  ;;  %v268_v37 = vmax.f32 %v225_v31, 0.0 }
  0x9a   :  { %v245_v53 = vmax.f32 %v167_v51, 0.0 }
  0x9c   :  { %v276_v56 = vpack.c.bf16 %v245_v53, %v244_v52 }
  0x9d   :  { %v226_v34 = vpop.f32.mrf.mxu3 }
  0x9e   :  { %709 = vmatmul.msk.bf16.vlgmr.msra.gmra.mxu1 %vm305_vm1, %v276_v56  ;;  %v227_v38 = vadd.f32 %v902_v48, %v226_v34 }
  0x9f   :  { %v169_v58 = vpop.f32.mrf.mxu0 }
  0xa0   :  { %v170_v59 = vadd.f32 %v902_v48, %v169_v58  ;;  %v269_v40 = vmax.f32 %v227_v38, 0.0 }
  0xa2   :  { %694 = vmatmul.msk.bf16.gmra.mxu0 %vm100_vm0, %v80_v57  ;;  %v246_v62 = vmax.f32 %v170_v59, 0.0  ;;  %v288_v41 = vpack.c.bf16 %v269_v40, %v268_v37  ;;  %v35_v59 = vld [vmem:[%s1204_s5] sm:$0x3] }
  0xa4   :  { %721 = vmatmul.msk.bf16.vlgmr.msrb.gmra.mxu3 %vm305_vm1, %v288_v41 }
  0xa5   :  { %v229_v43 = vpop.f32.mrf.mxu3 }
  0xa6   :  { %v230_v45 = vadd.f32 %v902_v48, %v229_v43 }
  0xa7   :  { %v171_v60 = vpop.f32.mrf.mxu0 }
  0xa8   :  { %v172_v61 = vadd.f32 %v902_v48, %v171_v60  ;;  %v270_v52 = vmax.f32 %v230_v45, 0.0  ;;  %v549_v60 = vsel %vm305_vm1, %v35_v59, 0 }
  0xa9   :  { %558 = vmatpush.bf16.xpose.msra.mxu2 %v549_v60  ;;  %749 = vmatpush.bf16.xpose.msra.mxu3 %v549_v60 }
  0xaa   :  { %v247_v63 = vmax.f32 %v172_v61, 0.0 }
  0xac   :  { %v277_v2 = vpack.c.bf16 %v247_v63, %v246_v62 }
  0xad   :  { %v231_v49 = vpop.f32.mrf.mxu3 }
  0xae   :  { %710 = vmatmul.msk.bf16.gmra.mxu1 %vm305_vm1, %v277_v2  ;;  %v232_v53 = vadd.f32 %v902_v48, %v231_v49 }
  0xaf   :  { %v174_v4 = vpop.f32.mrf.mxu0 }
  0xb0   :  { %v175_v5 = vadd.f32 %v902_v48, %v174_v4  ;;  %v271_v55 = vmax.f32 %v232_v53, 0.0 }
  0xb2   :  { %695 = vmatmul.msk.bf16.gmra.mxu0 %vm100_vm0, %v81_v3  ;;  %v248_v8 = vmax.f32 %v175_v5, 0.0  ;;  %v289_v56 = vpack.c.bf16 %v271_v55, %v270_v52 }
  0xb4   :  { %722 = vmatmul.msk.bf16.gmra.mxu3 %vm305_vm1, %v289_v56 }
  0xb5   :  { %v234_v58 = vpop.f32.mrf.mxu3 }
  0xb6   :  { %v235_v62 = vadd.f32 %v902_v48, %v234_v58 }
  0xb7   :  { %v176_v6 = vpop.f32.mrf.mxu0 }
  0xb8   :  { %v177_v7 = vadd.f32 %v902_v48, %v176_v6  ;;  %v272_v4 = vmax.f32 %v235_v62, 0.0 }
  0xba   :  { %v249_v9 = vmax.f32 %v177_v7, 0.0 }
  0xbc   :  { %v278_v12 = vpack.c.bf16 %v249_v9, %v248_v8 }
  0xbd   :  { %v236_v1 = vpop.f32.mrf.mxu3 }
  0xbe   :  { %711 = vmatmul.msk.bf16.gmra.mxu1 %vm305_vm1, %v278_v12  ;;  %v237_v5 = vadd.f32 %v902_v48, %v236_v1 }
  0xbf   :  { %v179_v14 = vpop.f32.mrf.mxu0 }
  0xc0   :  { %v180_v15 = vadd.f32 %v902_v48, %v179_v14  ;;  %v273_v7 = vmax.f32 %v237_v5, 0.0 }
  0xc2   :  { %696 = vmatmul.msk.bf16.gmra.mxu0 %vm100_vm0, %v82_v13  ;;  %v250_v18 = vmax.f32 %v180_v15, 0.0  ;;  %v290_v8 = vpack.c.bf16 %v273_v7, %v272_v4 }
  0xc4   :  { %723 = vmatmul.msk.bf16.gmra.mxu3 %vm305_vm1, %v290_v8 }
  0xc5   :  { %v239_v10 = vpop.f32.mrf.mxu3 }
  0xc6   :  { %v240_v12 = vadd.f32 %v902_v48, %v239_v10 }
  0xc7   :  { %v181_v16 = vpop.f32.mrf.mxu0 }
  0xc8   :  { %v182_v17 = vadd.f32 %v902_v48, %v181_v16 }
  0xca   :  { %v251_v19 = vmax.f32 %v182_v17, 0.0 }
  0xcc   :  { %v279_v20 = vpack.c.bf16 %v251_v19, %v250_v18  ;;  %v274_v18 = vmax.f32 %v240_v12, 0.0 }
  0xcd   :  { %v241_v15 = vpop.f32.mrf.mxu3 }
  0xce   :  { %712 = vmatmul.msk.bf16.gmra.mxu1 %vm305_vm1, %v279_v20  ;;  %v242_v19 = vadd.f32 %v902_v48, %v241_v15 }
  0xcf   :  { %v184_v21 = vpop.f32.mrf.mxu0 }
  0xd0   :  { %v185_v22 = vadd.f32 %v902_v48, %v184_v21 }
  0xd2   :  { %v252_v25 = vmax.f32 %v185_v22, 0.0  ;;  %v275_v22 = vmax.f32 %v242_v19, 0.0 }
  0xd7   :  { %v186_v23 = vpop.f32.mrf.mxu0 }
  0xd8   :  { %v187_v24 = vadd.f32 %v902_v48, %v186_v23  ;;  %v970_v23 = vld [vmem:[%s1203_s4] ss:$0 sm:$0xff] }
  0xda   :  { %v253_v26 = vmax.f32 %v187_v24, 0.0  ;;  %v291_v24 = vpack.c.bf16 %v275_v22, %v274_v18 }
  0xdc   :  { %v280_v27 = vpack.c.bf16 %v253_v26, %v252_v25  ;;  %724 = vmatmul.msk.bf16.gmra.mxu3 %vm305_vm1, %v291_v24 }
  0xde   :  { %713 = vmatmul.msk.bf16.gmra.mxu1 %vm305_vm1, %v280_v27 }
  0xdf   :  { %v189_v28 = vpop.f32.mrf.mxu0 }
  0xe0   :  { %v190_v30 = vadd.f32 %v902_v48, %v189_v28 }
  0xe2   :  { %v254_v35 = vmax.f32 %v190_v30, 0.0 }
  0xe7   :  { %v191_v32 = vpop.f32.mrf.mxu0 }
  0xe8   :  { %v192_v33 = vadd.f32 %v902_v48, %v191_v32 }
  0xea   :  { %v255_v36 = vmax.f32 %v192_v33, 0.0 }
  0xec   :  { %v281_v39 = vpack.c.bf16 %v255_v36, %v254_v35 }
  0xee   :  { %714 = vmatmul.msk.bf16.gmra.mxu1 %vm305_vm1, %v281_v39 }
  0xef   :  { %v194_v42 = vpop.f32.mrf.mxu0 }
  0xf0   :  { %v195_v44 = vadd.f32 %v902_v48, %v194_v42 }
  0xf2   :  { %v256_v50 = vmax.f32 %v195_v44, 0.0 }
  0xf7   :  { %v196_v46 = vpop.f32.mrf.mxu0 }
  0xf8   :  { %v197_v47 = vadd.f32 %v902_v48, %v196_v46 }
  0xfa   :  { %v257_v51 = vmax.f32 %v197_v47, 0.0 }
  0xfc   :  { %v282_v54 = vpack.c.bf16 %v257_v51, %v256_v50 }
  0xfe   :  { %715 = vmatmul.msk.bf16.gmra.mxu1 %vm305_vm1, %v282_v54 }
  0xff   :  { %v199_v57 = vpop.f32.mrf.mxu0 }
 0x100   :  { %v200_v61 = vadd.f32 %v902_v48, %v199_v57 }
 0x102   :  { %v258_v2 = vmax.f32 %v200_v61, 0.0 }
 0x107   :  { %v201_v63 = vpop.f32.mrf.mxu0 }
 0x108   :  { %v202_v0 = vadd.f32 %v902_v48, %v201_v63 }
 0x10a   :  { %v259_v3 = vmax.f32 %v202_v0, 0.0 }
 0x10c   :  { %v283_v6 = vpack.c.bf16 %v259_v3, %v258_v2 }
 0x10e   :  { %716 = vmatmul.msk.bf16.gmra.mxu1 %vm305_vm1, %v283_v6 }
 0x10f   :  { %v204_v9 = vpop.f32.mrf.mxu0 }
 0x110   :  { %v205_v11 = vadd.f32 %v902_v48, %v204_v9 }
 0x112   :  { %v260_v16 = vmax.f32 %v205_v11, 0.0 }
 0x117   :  { %v206_v13 = vpop.f32.mrf.mxu0 }
 0x118   :  { %v207_v14 = vadd.f32 %v902_v48, %v206_v13 }
 0x11a   :  { %v261_v17 = vmax.f32 %v207_v14, 0.0 }
 0x11b   :  { %v369_v20 = vpop.f32.mrf.mxu1 }
 0x11c   :  { %v284_v21 = vpack.c.bf16 %v261_v17, %v260_v16  ;;  %v370_v26 = vadd.f32 %v970_v23, %v369_v20 }
 0x11e   :  { %717 = vmatmul.msk.bf16.gmra.mxu1 %vm305_vm1, %v284_v21  ;;  %v449_v29 = vmax.f32 %v370_v26, 0.0 }
 0x11f   :  { %v209_v25 = vpop.f32.mrf.mxu0 }
 0x120   :  { %v210_v30 = vadd.f32 %v902_v48, %v209_v25 }
 0x122   :  { %v262_v35 = vmax.f32 %v210_v30, 0.0 }
 0x123   :  { %v371_v27 = vpop.f32.mrf.mxu1 }
 0x124   :  { %v372_v28 = vadd.f32 %v970_v23, %v371_v27 }
 0x126   :  { %v450_v31 = vmax.f32 %v372_v28, 0.0 }
 0x127   :  { %v211_v32 = vpop.f32.mrf.mxu0  ;;  %v429_v19 = vpop.f32.mrf.mxu3 }
 0x128   :  { %v481_v33 = vpack.c.bf16 %v450_v31, %v449_v29  ;;  %v212_v34 = vadd.f32 %v902_v48, %v211_v32  ;;  %v430_v25 = vadd.f32 %v970_v23, %v429_v19 }
 0x12a   :  { %v263_v36 = vmax.f32 %v212_v34, 0.0  ;;  %725 = vmatmul.msk.bf16.vlgmr.msra.gmra.mxu2 %vm305_vm1, %v481_v33  ;;  %v473_v28 = vmax.f32 %v430_v25, 0.0 }
 0x12b   :  { %v374_v37 = vpop.f32.mrf.mxu1 }
 0x12c   :  { %v285_v38 = vpack.c.bf16 %v263_v36, %v262_v35  ;;  %v375_v40 = vadd.f32 %v970_v23, %v374_v37 }
 0x12e   :  { %718 = vmatmul.msk.bf16.gmra.mxu1 %vm305_vm1, %v285_v38  ;;  %v451_v43 = vmax.f32 %v375_v40, 0.0 }
 0x12f   :  { %v214_v39 = vpop.f32.mrf.mxu0  ;;  %v431_v27 = vpop.f32.mrf.mxu3 }
 0x130   :  { %v215_v44 = vadd.f32 %v902_v48, %v214_v39  ;;  %v432_v29 = vadd.f32 %v970_v23, %v431_v27 }
 0x132   :  { %v264_v50 = vmax.f32 %v215_v44, 0.0  ;;  %v474_v30 = vmax.f32 %v432_v29, 0.0 }
 0x133   :  { %v376_v41 = vpop.f32.mrf.mxu1 }
 0x134   :  { %v377_v42 = vadd.f32 %v970_v23, %v376_v41  ;;  %v1004_v32 = vpack.c.bf16 %v474_v30, %v473_v28 }
 0x136   :  { %v452_v45 = vmax.f32 %v377_v42, 0.0 }
 0x137   :  { %v216_v46 = vpop.f32.mrf.mxu0  ;;  %v434_v34 = vpop.f32.mrf.mxu3 }
 0x138   :  { %v482_v47 = vpack.c.bf16 %v452_v45, %v451_v43  ;;  %v217_v49 = vadd.f32 %v902_v48, %v216_v46  ;;  %v435_v39 = vadd.f32 %v970_v23, %v434_v34 }
 0x13a   :  { %v265_v51 = vmax.f32 %v217_v49, 0.0  ;;  %726 = vmatmul.msk.bf16.gmra.mxu2 %vm305_vm1, %v482_v47  ;;  %v475_v42 = vmax.f32 %v435_v39, 0.0 }
 0x13b   :  { %v379_v52 = vpop.f32.mrf.mxu1 }
 0x13c   :  { %v286_v53 = vpack.c.bf16 %v265_v51, %v264_v50  ;;  %v380_v55 = vadd.f32 %v970_v23, %v379_v52 }
 0x13e   :  { %719 = vmatmul.msk.bf16.gmra.mxu1 %vm305_vm1, %v286_v53  ;;  %v453_v58 = vmax.f32 %v380_v55, 0.0 }
 0x13f   :  { %v219_v54 = vpop.f32.mrf.mxu0  ;;  %v436_v41 = vpop.f32.mrf.mxu3 }
 0x140   :  { %v220_v59 = vadd.f32 %v902_v48, %v219_v54  ;;  %v437_v43 = vadd.f32 %v970_v23, %v436_v41 }
 0x142   :  { %v266_v0 = vmax.f32 %v220_v59, 0.0  ;;  %v476_v44 = vmax.f32 %v437_v43, 0.0 }
 0x143   :  { %v381_v56 = vpop.f32.mrf.mxu1 }
 0x144   :  { %v382_v57 = vadd.f32 %v970_v23, %v381_v56  ;;  %v494_v45 = vpack.c.bf16 %v476_v44, %v475_v42 }
 0x146   :  { %v454_v60 = vmax.f32 %v382_v57, 0.0  ;;  %738 = vmatmul.msk.bf16.vlgmr.msra.gmra.mxu3 %vm305_vm1, %v494_v45 }
 0x147   :  { %v221_v61 = vpop.f32.mrf.mxu0  ;;  %v439_v49 = vpop.f32.mrf.mxu3 }
 0x148   :  { %v483_v62 = vpack.c.bf16 %v454_v60, %v453_v58  ;;  %v222_v63 = vadd.f32 %v902_v48, %v221_v61  ;;  %v440_v54 = vadd.f32 %v970_v23, %v439_v49 }
 0x14a   :  { %v267_v1 = vmax.f32 %v222_v63, 0.0  ;;  %727 = vmatmul.msk.bf16.gmra.mxu2 %vm305_vm1, %v483_v62  ;;  %v477_v57 = vmax.f32 %v440_v54, 0.0 }
 0x14b   :  { %v384_v2 = vpop.f32.mrf.mxu1 }
 0x14c   :  { %v287_v3 = vpack.c.bf16 %v267_v1, %v266_v0  ;;  %v385_v4 = vadd.f32 %v970_v23, %v384_v2 }
 0x14e   :  { %720 = vmatmul.msk.bf16.gmra.mxu1 %vm305_vm1, %v287_v3  ;;  %v455_v7 = vmax.f32 %v385_v4, 0.0 }
 0x14f   :  { %v441_v56 = vpop.f32.mrf.mxu3 }
 0x150   :  { %v442_v58 = vadd.f32 %v970_v23, %v441_v56 }
 0x152   :  { %v478_v59 = vmax.f32 %v442_v58, 0.0 }
 0x153   :  { %v386_v5 = vpop.f32.mrf.mxu1 }
 0x154   :  { %v387_v6 = vadd.f32 %v970_v23, %v386_v5  ;;  %v495_v60 = vpack.c.bf16 %v478_v59, %v477_v57  ;;  %v1024_v5 = vld [vmem:[%s1205_s6] ss:$0 sm:$0xff] }
 0x156   :  { %v456_v8 = vmax.f32 %v387_v6, 0.0  ;;  %739 = vmatmul.msk.bf16.gmra.mxu3 %vm305_vm1, %v495_v60 }
 0x158   :  { %v484_v9 = vpack.c.bf16 %v456_v8, %v455_v7 }
 0x15a   :  { %728 = vmatmul.msk.bf16.gmra.mxu2 %vm305_vm1, %v484_v9 }
 0x15b   :  { %v389_v10 = vpop.f32.mrf.mxu1 }
 0x15c   :  { %v390_v48 = vadd.f32 %v970_v23, %v389_v10 }
 0x15e   :  { %v457_v13 = vmax.f32 %v390_v48, 0.0 }
 0x15f   :  { %v444_v63 = vpop.f32.mrf.mxu3 }
 0x160   :  { %v445_v4 = vadd.f32 %v970_v23, %v444_v63 }
 0x162   :  { %v479_v8 = vmax.f32 %v445_v4, 0.0 }
 0x163   :  { %v391_v11 = vpop.f32.mrf.mxu1 }
 0x164   :  { %v392_v12 = vadd.f32 %v970_v23, %v391_v11 }
 0x166   :  { %v458_v14 = vmax.f32 %v392_v12, 0.0 }
 0x167   :  { %v446_v7 = vpop.f32.mrf.mxu3 }
 0x168   :  { %v485_v15 = vpack.c.bf16 %v458_v14, %v457_v13  ;;  %v447_v9 = vadd.f32 %v970_v23, %v446_v7 }
 0x16a   :  { %729 = vmatmul.msk.bf16.gmra.mxu2 %vm305_vm1, %v485_v15  ;;  %v480_v11 = vmax.f32 %v447_v9, 0.0 }
 0x16b   :  { %v394_v16 = vpop.f32.mrf.mxu1 }
 0x16c   :  { %v395_v17 = vadd.f32 %v970_v23, %v394_v16  ;;  %v496_v12 = vpack.c.bf16 %v480_v11, %v479_v8 }
 0x16e   :  { %v459_v21 = vmax.f32 %v395_v17, 0.0  ;;  %740 = vmatmul.msk.bf16.gmra.mxu3 %vm305_vm1, %v496_v12 }
 0x173   :  { %v396_v18 = vpop.f32.mrf.mxu1 }
 0x174   :  { %v397_v20 = vadd.f32 %v970_v23, %v396_v18 }
 0x176   :  { %v460_v22 = vmax.f32 %v397_v20, 0.0 }
 0x178   :  { %v486_v24 = vpack.c.bf16 %v460_v22, %v459_v21 }
 0x17a   :  { %730 = vmatmul.msk.bf16.gmra.mxu2 %vm305_vm1, %v486_v24 }
 0x17b   :  { %v399_v26 = vpop.f32.mrf.mxu1 }
 0x17c   :  { %v400_v31 = vadd.f32 %v970_v23, %v399_v26 }
 0x17e   :  { %v461_v36 = vmax.f32 %v400_v31, 0.0 }
 0x183   :  { %v401_v33 = vpop.f32.mrf.mxu1 }
 0x184   :  { %v402_v35 = vadd.f32 %v970_v23, %v401_v33 }
 0x186   :  { %v462_v37 = vmax.f32 %v402_v35, 0.0 }
 0x188   :  { %v487_v38 = vpack.c.bf16 %v462_v37, %v461_v36 }
 0x18a   :  { %731 = vmatmul.msk.bf16.gmra.mxu2 %vm305_vm1, %v487_v38 }
 0x18b   :  { %v404_v40 = vpop.f32.mrf.mxu1 }
 0x18c   :  { %v405_v46 = vadd.f32 %v970_v23, %v404_v40 }
 0x18e   :  { %v463_v51 = vmax.f32 %v405_v46, 0.0 }
 0x193   :  { %v406_v47 = vpop.f32.mrf.mxu1 }
 0x194   :  { %v407_v50 = vadd.f32 %v970_v23, %v406_v47 }
 0x196   :  { %v464_v52 = vmax.f32 %v407_v50, 0.0 }
 0x198   :  { %v488_v53 = vpack.c.bf16 %v464_v52, %v463_v51 }
 0x19a   :  { %732 = vmatmul.msk.bf16.gmra.mxu2 %vm305_vm1, %v488_v53 }
 0x19b   :  { %v409_v55 = vpop.f32.mrf.mxu1 }
 0x19c   :  { %v410_v61 = vadd.f32 %v970_v23, %v409_v55 }
 0x19e   :  { %v465_v1 = vmax.f32 %v410_v61, 0.0 }
 0x1a3   :  { %v411_v62 = vpop.f32.mrf.mxu1 }
 0x1a4   :  { %v412_v0 = vadd.f32 %v970_v23, %v411_v62 }
 0x1a6   :  { %v466_v2 = vmax.f32 %v412_v0, 0.0 }
 0x1a8   :  { %v489_v3 = vpack.c.bf16 %v466_v2, %v465_v1 }
 0x1aa   :  { %733 = vmatmul.msk.bf16.gmra.mxu2 %vm305_vm1, %v489_v3 }
 0x1ab   :  { %v414_v6 = vpop.f32.mrf.mxu1 }
 0x1ac   :  { %v415_v13 = vadd.f32 %v970_v23, %v414_v6 }
 0x1ad   :  { %v560_v10 = vpop.f32.mrf.mxu2 }
 0x1ae   :  { %v561_v48 = vadd.f32 %v1024_v5, %v560_v10  ;;  %v467_v17 = vmax.f32 %v415_v13, 0.0 }
 0x1b0   :  { %641 = vst.msk [vmem:[%s1206_s7] sm:$0xff] %vm640_vm2, %v561_v48 }
 0x1b3   :  { %v416_v14 = vpop.f32.mrf.mxu1 }
 0x1b4   :  { %v417_v15 = vadd.f32 %v970_v23, %v416_v14 }
 0x1b5   :  { %v562_v16 = vpop.f32.mrf.mxu2 }
 0x1b6   :  { %v468_v18 = vmax.f32 %v417_v15, 0.0  ;;  %v563_v19 = vadd.f32 %v1024_v5, %v562_v16 }
 0x1b8   :  { %v490_v20 = vpack.c.bf16 %v468_v18, %v467_v17  ;;  %642 = vst.msk [vmem:[%s1206_s7 + $0x8] sm:$0xff] %vm640_vm2, %v563_v19 }
 0x1ba   :  { %734 = vmatmul.msk.bf16.gmra.mxu2 %vm305_vm1, %v490_v20 }
 0x1bb   :  { %v419_v21 = vpop.f32.mrf.mxu1 }
 0x1bc   :  { %v420_v25 = vadd.f32 %v970_v23, %v419_v21 }
 0x1bd   :  { %v565_v22 = vpop.f32.mrf.mxu2 }
 0x1be   :  { %v566_v24 = vadd.f32 %v1024_v5, %v565_v22  ;;  %v469_v29 = vmax.f32 %v420_v25, 0.0 }
 0x1c0   :  { %643 = vst.msk [vmem:[%s1206_s7 + $0x10] sm:$0xff] %vm640_vm2, %v566_v24 }
 0x1c3   :  { %v421_v26 = vpop.f32.mrf.mxu1 }
 0x1c4   :  { %v422_v27 = vadd.f32 %v970_v23, %v421_v26 }
 0x1c5   :  { %v567_v28 = vpop.f32.mrf.mxu2 }
 0x1c6   :  { %v470_v30 = vmax.f32 %v422_v27, 0.0  ;;  %v568_v31 = vadd.f32 %v1024_v5, %v567_v28 }
 0x1c8   :  { %v491_v33 = vpack.c.bf16 %v470_v30, %v469_v29  ;;  %644 = vst.msk [vmem:[%s1206_s7 + $0x18] sm:$0xff] %vm640_vm2, %v568_v31 }
 0x1c9   :  { %v625_v59 = vpop.f32.mrf.mxu3 }
 0x1ca   :  { %735 = vmatmul.msk.bf16.gmra.mxu2 %vm305_vm1, %v491_v33  ;;  %v626_v61 = vadd.f32 %v1024_v5, %v625_v59 }
 0x1cb   :  { %v424_v34 = vpop.f32.mrf.mxu1 }
 0x1cc   :  { %v425_v37 = vadd.f32 %v970_v23, %v424_v34  ;;  %667 = vst.msk [vmem:[%s1206_s7 + $0xd0] sm:$0xff] %vm640_vm2, %v626_v61 }
 0x1cd   :  { %v570_v35 = vpop.f32.mrf.mxu2 }
 0x1ce   :  { %v571_v36 = vadd.f32 %v1024_v5, %v570_v35  ;;  %v471_v41 = vmax.f32 %v425_v37, 0.0 }
 0x1d0   :  { %645 = vst.msk [vmem:[%s1206_s7 + $0x20] sm:$0xff] %vm640_vm2, %v571_v36 }
 0x1d1   :  { %v627_v63 = vpop.f32.mrf.mxu3 }
 0x1d2   :  { %v628_v1 = vadd.f32 %v1024_v5, %v627_v63 }
 0x1d3   :  { %v426_v38 = vpop.f32.mrf.mxu1 }
 0x1d4   :  { %v427_v39 = vadd.f32 %v970_v23, %v426_v38  ;;  %668 = vst.msk [vmem:[%s1206_s7 + $0xd8] sm:$0xff] %vm640_vm2, %v628_v1 }
 0x1d5   :  { %v572_v40 = vpop.f32.mrf.mxu2 }
 0x1d6   :  { %v472_v42 = vmax.f32 %v427_v39, 0.0  ;;  %v573_v43 = vadd.f32 %v1024_v5, %v572_v40 }
 0x1d8   :  { %v492_v44 = vpack.c.bf16 %v472_v42, %v471_v41  ;;  %646 = vst.msk [vmem:[%s1206_s7 + $0x28] sm:$0xff] %vm640_vm2, %v573_v43 }
 0x1d9   :  { %v630_v3 = vpop.f32.mrf.mxu3 }
 0x1da   :  { %736 = vmatmul.msk.bf16.gmra.mxu2 %vm305_vm1, %v492_v44  ;;  %v631_v6 = vadd.f32 %v1024_v5, %v630_v3 }
 0x1dc   :  { %669 = vst.msk [vmem:[%s1206_s7 + $0xe0] sm:$0xff] %vm640_vm2, %v631_v6 }
 0x1dd   :  { %v575_v45 = vpop.f32.mrf.mxu2 }
 0x1de   :  { %v576_v46 = vadd.f32 %v1024_v5, %v575_v45 }
 0x1e0   :  { %647 = vst.msk [vmem:[%s1206_s7 + $0x30] sm:$0xff] %vm640_vm2, %v576_v46 }
 0x1e1   :  { %v632_v8 = vpop.f32.mrf.mxu3 }
 0x1e2   :  { %v633_v10 = vadd.f32 %v1024_v5, %v632_v8 }
 0x1e4   :  { %670 = vst.msk [vmem:[%s1206_s7 + $0xe8] sm:$0xff] %vm640_vm2, %v633_v10 }
 0x1e5   :  { %v577_v23 = vpop.f32.mrf.mxu2 }
 0x1e6   :  { %v578_v47 = vadd.f32 %v1024_v5, %v577_v23 }
 0x1e8   :  { %648 = vst.msk [vmem:[%s1206_s7 + $0x38] sm:$0xff] %vm640_vm2, %v578_v47 }
 0x1ea   :  { %737 = vmatmul.msk.bf16.gmra.mxu2 %vm305_vm1, %v1004_v32 }
 0x1ed   :  { %v580_v49 = vpop.f32.mrf.mxu2 }
 0x1ee   :  { %v581_v50 = vadd.f32 %v1024_v5, %v580_v49 }
 0x1f0   :  { %649 = vst.msk [vmem:[%s1206_s7 + $0x40] sm:$0xff] %vm640_vm2, %v581_v50 }
 0x1f1   :  { %v635_v11 = vpop.f32.mrf.mxu3 }
 0x1f2   :  { %v636_v13 = vadd.f32 %v1024_v5, %v635_v11 }
 0x1f4   :  { %671 = vst.msk [vmem:[%s1206_s7 + $0xf0] sm:$0xff] %vm640_vm2, %v636_v13 }
 0x1f5   :  { %v582_v51 = vpop.f32.mrf.mxu2 }
 0x1f6   :  { %v583_v52 = vadd.f32 %v1024_v5, %v582_v51 }
 0x1f8   :  { %650 = vst.msk [vmem:[%s1206_s7 + $0x48] sm:$0xff] %vm640_vm2, %v583_v52 }
 0x1f9   :  { %v637_v15 = vpop.f32.mrf.mxu3 }
 0x1fa   :  { %v638_v17 = vadd.f32 %v1024_v5, %v637_v15 }
 0x1fc   :  { %672 = vst.msk [vmem:[%s1206_s7 + $0xf8] sm:$0xff] %vm640_vm2, %v638_v17 }
 0x1fd   :  { %v585_v53 = vpop.f32.mrf.mxu2 }
 0x1fe   :  { %v586_v54 = vadd.f32 %v1024_v5, %v585_v53 }
 0x200   :  { %651 = vst.msk [vmem:[%s1206_s7 + $0x50] sm:$0xff] %vm640_vm2, %v586_v54 }
 0x205   :  { %v587_v32 = vpop.f32.mrf.mxu2 }
 0x206   :  { %v588_v55 = vadd.f32 %v1024_v5, %v587_v32 }
 0x208   :  { %652 = vst.msk [vmem:[%s1206_s7 + $0x58] sm:$0xff] %vm640_vm2, %v588_v55 }
 0x20d   :  { %v590_v56 = vpop.f32.mrf.mxu2 }
 0x20e   :  { %v591_v57 = vadd.f32 %v1024_v5, %v590_v56 }
 0x210   :  { %653 = vst.msk [vmem:[%s1206_s7 + $0x60] sm:$0xff] %vm640_vm2, %v591_v57 }
 0x215   :  { %v592_v58 = vpop.f32.mrf.mxu2 }
 0x216   :  { %v593_v60 = vadd.f32 %v1024_v5, %v592_v58 }
 0x218   :  { %654 = vst.msk [vmem:[%s1206_s7 + $0x68] sm:$0xff] %vm640_vm2, %v593_v60 }
 0x21d   :  { %v595_v62 = vpop.f32.mrf.mxu2 }
 0x21e   :  { %v596_v0 = vadd.f32 %v1024_v5, %v595_v62 }
 0x220   :  { %655 = vst.msk [vmem:[%s1206_s7 + $0x70] sm:$0xff] %vm640_vm2, %v596_v0 }
 0x225   :  { %v597_v2 = vpop.f32.mrf.mxu2 }
 0x226   :  { %v598_v4 = vadd.f32 %v1024_v5, %v597_v2 }
 0x228   :  { %656 = vst.msk [vmem:[%s1206_s7 + $0x78] sm:$0xff] %vm640_vm2, %v598_v4 }
 0x22d   :  { %v600_v7 = vpop.f32.mrf.mxu2 }
 0x22e   :  { %v601_v9 = vadd.f32 %v1024_v5, %v600_v7 }
 0x230   :  { %657 = vst.msk [vmem:[%s1206_s7 + $0x80] sm:$0xff] %vm640_vm2, %v601_v9 }
 0x235   :  { %v602_v48 = vpop.f32.mrf.mxu2 }
 0x236   :  { %v603_v12 = vadd.f32 %v1024_v5, %v602_v48 }
 0x238   :  { %658 = vst.msk [vmem:[%s1206_s7 + $0x88] sm:$0xff] %vm640_vm2, %v603_v12 }
 0x23d   :  { %v605_v14 = vpop.f32.mrf.mxu2 }
 0x23e   :  { %v606_v16 = vadd.f32 %v1024_v5, %v605_v14 }
 0x240   :  { %659 = vst.msk [vmem:[%s1206_s7 + $0x90] sm:$0xff] %vm640_vm2, %v606_v16 }
 0x245   :  { %v607_v18 = vpop.f32.mrf.mxu2 }
 0x246   :  { %v608_v19 = vadd.f32 %v1024_v5, %v607_v18 }
 0x248   :  { %660 = vst.msk [vmem:[%s1206_s7 + $0x98] sm:$0xff] %vm640_vm2, %v608_v19 }
 0x24d   :  { %v610_v20 = vpop.f32.mrf.mxu2 }
 0x24e   :  { %v611_v21 = vadd.f32 %v1024_v5, %v610_v20 }
 0x250   :  { %661 = vst.msk [vmem:[%s1206_s7 + $0xa0] sm:$0xff] %vm640_vm2, %v611_v21 }
 0x255   :  { %v612_v22 = vpop.f32.mrf.mxu2 }
 0x256   :  { %v613_v24 = vadd.f32 %v1024_v5, %v612_v22 }
 0x258   :  { %662 = vst.msk [vmem:[%s1206_s7 + $0xa8] sm:$0xff] %vm640_vm2, %v613_v24 }
 0x25d   :  { %v615_v25 = vpop.f32.mrf.mxu2 }
 0x25e   :  { %v616_v26 = vadd.f32 %v1024_v5, %v615_v25 }
 0x260   :  { %663 = vst.msk [vmem:[%s1206_s7 + $0xb0] sm:$0xff] %vm640_vm2, %v616_v26 }
 0x265   :  { %v617_v27 = vpop.f32.mrf.mxu2 }
 0x266   :  { %v618_v28 = vadd.f32 %v1024_v5, %v617_v27 }
 0x268   :  { %664 = vst.msk [vmem:[%s1206_s7 + $0xb8] sm:$0xff] %vm640_vm2, %v618_v28 }
 0x26d   :  { %v620_v29 = vpop.f32.mrf.mxu2 }
 0x26e   :  { %v621_v30 = vadd.f32 %v1024_v5, %v620_v29 }
 0x270   :  { %665 = vst.msk [vmem:[%s1206_s7 + $0xc0] sm:$0xff] %vm640_vm2, %v621_v30 }
 0x275   :  { %v622_v31 = vpop.f32.mrf.mxu2 }
 0x276   :  { %v623_v33 = vadd.f32 %v1024_v5, %v622_v31 }
 0x278   :  { %666 = vst.msk [vmem:[%s1206_s7 + $0xc8] sm:$0xff] %vm640_vm2, %v623_v33 }

</bundles_post_ra>
